<compile_context>
chip_gen: v6e
topology: v6e:2x2x1
jax: 0.10.0
libtpu: 0.0.40
codegen_flags: <defaults>
</compile_context>

<pallas_src>
import functools

import jax
import jax.numpy as jnp
from jax.experimental import pallas as pl
from jax.experimental.pallas import tpu as pltpu


# Tunables (score kernel is purely HBM-bandwidth-bound; these just keep the
# DMA pipeline deep and the tiles big while staying inside scoped VMEM).
VMEM_TILE_BUDGET_BYTES = 20 << 20   # budget for streamed tiles in the score kernel
VMEM_LIMIT_BYTES = 32 << 20         # scoped-VMEM limit handed to Mosaic
TABLE_PIPELINE_DEPTH = 3            # buffers for the streamed entity-table specs
MAX_TILE_N = 16384                  # lane-dense upper bound on the entity tile


# --------------------------------------------------------------------------
# Kernel 1 (fused front): conv(+bn0 folded) + ReLU + fc(+bn2 folded) + ReLU,
# plus the ComplEx LHS prep.  Runs once per batch; outputs bf16 MXU operands.
# --------------------------------------------------------------------------
def _front_kernel(x_ref, wfront_ref, bconv_ref, wfc_ref, bfc_ref,
                  e1r_ref, e1i_ref, rr_ref, ri_ref,
                  h_ref, cplx_ref):
    # "conv" as one dense matmul on the flattened stacked embedding
    # (im2col + bn0 already folded into wfront at prep time).
    feat = jnp.dot(x_ref[...], wfront_ref[...],
                   preferred_element_type=jnp.float32) + bconv_ref[...]
    feat = jnp.maximum(feat, 0.0)                    # ReLU; dropout = identity
    # fc (+ folded bn2) + ReLU
    h = jnp.dot(feat, wfc_ref[...],
                preferred_element_type=jnp.float32) + bfc_ref[...]
    h_ref[...] = jnp.maximum(h, 0.0).astype(jnp.bfloat16)

    # ComplEx: 4 matmuls collapsed into 1 via the stacked LHS
    #   S = [rr*e1r - ri*e1i | rr*e1i + ri*e1r] @ [E2r ; E2i]^T
    e1r = e1r_ref[...]
    e1i = e1i_ref[...]
    rr = rr_ref[...]
    ri = ri_ref[...]
    cplx_ref[...] = jnp.concatenate(
        [rr * e1r - ri * e1i, rr * e1i + ri * e1r],
        axis=-1).astype(jnp.bfloat16)


# --------------------------------------------------------------------------
# Kernel 2: entity-tiled scoring.  One streamed (3D, tile_n) bf16 table per
# tile; ConvE dot on rows [:D], ComplEx dot on rows [D:]; sigmoid + average.
# --------------------------------------------------------------------------
def _score_kernel(h_ref, cplx_ref, tbl_ref, b_ref, out_ref, *, dim):
    conve = (jnp.dot(h_ref[...], tbl_ref[:dim, :],
                     preferred_element_type=jnp.float32)
             + b_ref[...].astype(jnp.float32))
    cplx = jnp.dot(cplx_ref[...], tbl_ref[dim:, :],
                   preferred_element_type=jnp.float32)
    out_ref[...] = (jax.nn.sigmoid(conve) + jax.nn.sigmoid(cplx)) * 0.5


# --------------------------------------------------------------------------
# One-time constant preparation (hoisted out of the forward hot path)
# --------------------------------------------------------------------------
def _round_up(n, m):
    return ((n + m - 1) // m) * m


def prepare_inference_params(params, cfg, *,
                             max_tile_n=MAX_TILE_N,
                             vmem_tile_budget=VMEM_TILE_BUDGET_BYTES,
                             table_bufs=TABLE_PIPELINE_DEPTH,
                             max_batch=128):
    D = cfg["entity_dim"]
    d1, d2 = cfg["d1"], cfg["d2"]
    K = cfg["kernel"]
    C = cfg["channels"]
    N = cfg["num_entities"]
    Ho = 2 * d1 - K + 1
    Wo = d2 - K + 1
    P = Ho * Wo
    KK = K * K
    F = 2 * d1 * d2
    eps = 1e-5

    # --- bn0 (single-channel eval affine) folded into conv weight/bias ---
    #   conv(s0*x + t0) = s0*(W*x) + t0*sum(W) + b
    s0 = params["bn0_gamma"] / jnp.sqrt(params["bn0_var"] + eps)
    t0 = params["bn0_beta"] - params["bn0_mean"] * s0
    w2d = params["conv_w"].reshape(C, KK)                        # (C, KK)
    wconv = (w2d.T * s0).astype(jnp.float32)                     # (KK, C)
    bconv = (params["conv_b"] + t0 * w2d.sum(axis=1)).astype(jnp.float32)

    # --- im2col + conv folded into ONE dense matrix on the flat stacked input:
    #   Wfront[f, p*C + c] = wconv[k, c]  with f = (i+ki)*d2 + (j+kj),
    #   p = i*Wo + j, k = ki*K + kj.   Exact (conv is linear).
    ii, jj = jnp.meshgrid(jnp.arange(Ho), jnp.arange(Wo), indexing="ij")
    ki, kj = jnp.meshgrid(jnp.arange(K), jnp.arange(K), indexing="ij")
    pos = ((ii.reshape(P, 1) + ki.reshape(1, KK)) * d2
           + (jj.reshape(P, 1) + kj.reshape(1, KK)))             # (P, KK)
    onehot = jax.nn.one_hot(pos, F, dtype=jnp.float32)           # (P, KK, F)
    wfront = jnp.einsum("pkf,kc->fpc", onehot, wconv).reshape(F, P * C)
    bconv_big = jnp.tile(bconv, (P,)).reshape(1, P * C).astype(jnp.float32)

    # --- fc weight permuted to the (p-major, c-minor) activation layout with
    #     the bn2 eval affine folded in:  (x@W + b)*s2 + t2 = x@(W*s2) + ...
    s2 = params["bn2_gamma"] / jnp.sqrt(params["bn2_var"] + eps)
    t2 = params["bn2_beta"] - params["bn2_mean"] * s2
    wfc = jnp.transpose(params["fc_w"].reshape(D, C, P), (2, 1, 0)).reshape(P * C, D)
    wfc = (wfc * s2[None, :]).astype(jnp.float32)
    bfc = (params["fc_b"] * s2 + t2).reshape(1, D).astype(jnp.float32)

    # --- entity-axis tiling sized from the per-tile VMEM footprint ---
    # streamed bytes per entity column:
    #   table (3D rows, bf16) + bias (bf16), table_bufs-deep pipeline,
    #   + double-buffered f32 output rows (max_batch hint).
    bytes_per_col = table_bufs * (3 * D * 2 + 2) + 2 * 4 * max_batch
    tile_fit = max(128, (vmem_tile_budget // bytes_per_col) // 128 * 128)
    tile_n = int(min(tile_fit, max_tile_n, _round_up(N, 128)))
    n_pad = _round_up(N, tile_n)
    pad = n_pad - N

    # Merged entity table: rows [0:D] ConvE, [D:2D] ComplEx-real, [2D:3D] imag.
    # bf16 halves the dominant HBM stream.  (D is a multiple of 16 here so the
    # in-kernel static row slices stay bf16-sublane aligned.)
    etab = jnp.concatenate([params["conve_entity"].T,
                            params["cplx_entity_real"].T,
                            params["cplx_entity_img"].T], axis=0)
    etab = jnp.pad(etab.astype(jnp.bfloat16), ((0, 0), (0, pad)))   # (3D, n_pad)

    b_out = jnp.pad(params["b"].reshape(1, N).astype(jnp.bfloat16),
                    ((0, 0), (0, pad)))                             # (1, n_pad)

    return dict(
        wfront=wfront, bconv_big=bconv_big, wfc=wfc, bfc=bfc,
        etab=etab, b_out=b_out,
        conve_entity=params["conve_entity"],
        conve_relation=params["conve_relation"],
        cplx_entity_real=params["cplx_entity_real"],
        cplx_entity_img=params["cplx_entity_img"],
        cplx_rel_real=params["cplx_rel_real"],
        cplx_rel_img=params["cplx_rel_img"],
        tile_n=tile_n, n_pad=n_pad, table_bufs=table_bufs,
    )


# --------------------------------------------------------------------------
# Forward wrapper
# --------------------------------------------------------------------------
def hyper_e_forward(prep, cfg, e1, r):
    D = cfg["entity_dim"]
    N = cfg["num_entities"]
    B = e1.shape[0]
    tile_n = prep["tile_n"]
    n_pad = prep["n_pad"]
    bufs = prep["table_bufs"]

    vmem = pl.BlockSpec(memory_space=pltpu.MemorySpace.VMEM)

    # ConvE front glue is now just two lookups + a concat (the stacked
    # (B, 2*d1, d2) image flattened row-major IS [e1_emb | r_emb]).
    x = jnp.concatenate([prep["conve_entity"][e1],
                         prep["conve_relation"][r]], axis=1).astype(jnp.float32)

    # ComplEx lookups (tiny (B, D) vectors)
    e1r = prep["cplx_entity_real"][e1].astype(jnp.float32)
    e1i = prep["cplx_entity_img"][e1].astype(jnp.float32)
    rr = prep["cplx_rel_real"][r].astype(jnp.float32)
    ri = prep["cplx_rel_img"][r].astype(jnp.float32)

    # ---- Kernel 1: fused ConvE front + ComplEx LHS prep (one launch) ----
    h_bf, cplx_bf = pl.pallas_call(
        _front_kernel,
        out_shape=(jax.ShapeDtypeStruct((B, D), jnp.bfloat16),
                   jax.ShapeDtypeStruct((B, 2 * D), jnp.bfloat16)),
        in_specs=[vmem] * 9,
        out_specs=(vmem, vmem),
    )(x, prep["wfront"], prep["bconv_big"], prep["wfc"], prep["bfc"],
      e1r, e1i, rr, ri)

    # ---- Kernel 2: entity-tiled scoring (single merged bf16 table stream) --
    def tiled(rows):
        try:
            return pl.BlockSpec((rows, tile_n), lambda n: (0, n),
                                pipeline_mode=pl.Buffered(bufs))
        except (TypeError, AttributeError):
            # Older runtimes without pipeline_mode/Buffered: default 2-deep.
            return pl.BlockSpec((rows, tile_n), lambda n: (0, n))

    def full(rows, cols):
        return pl.BlockSpec((rows, cols), lambda n: (0, 0))

    # HBM-bound roofline hint for XLA scheduling.
    flops = 2 * B * (3 * D) * n_pad
    bytes_accessed = (3 * D * n_pad * 2      # merged bf16 table
                      + n_pad * 2            # bf16 bias row
                      + B * n_pad * 4        # f32 output
                      + B * 3 * D * 2)       # resident bf16 LHS operands
    cost = pl.CostEstimate(flops=flops,
                           transcendentals=2 * B * n_pad,
                           bytes_accessed=bytes_accessed)

    scores_pad = pl.pallas_call(
        functools.partial(_score_kernel, dim=D),
        out_shape=jax.ShapeDtypeStruct((B, n_pad), jnp.float32),
        grid=(n_pad // tile_n,),
        in_specs=[full(B, D), full(B, 2 * D), tiled(3 * D), tiled(1)],
        out_specs=pl.BlockSpec((B, tile_n), lambda n: (0, n)),
        compiler_params=pltpu.CompilerParams(
            dimension_semantics=("parallel",),
            vmem_limit_bytes=VMEM_LIMIT_BYTES),
        cost_estimate=cost,
    )(h_bf, cplx_bf, prep["etab"], prep["b_out"])

    # Padded entity columns produce sigmoid(0)=0.5 junk -> slice them off.
    return scores_pad[:, :N]


# --------------------------------------------------------------------------
# Pure-JAX reference (f32, for numerical sanity check)
# --------------------------------------------------------------------------
def hyper_e_reference(params, cfg, e1, r):
    d1, d2 = cfg["d1"], cfg["d2"]
    B = e1.shape[0]
    eps = 1e-5

    E1 = params["conve_entity"][e1].reshape(B, 1, d1, d2)
    R = params["conve_relation"][r].reshape(B, 1, d1, d2)
    stacked = jnp.concatenate([E1, R], axis=2)
    s0 = params["bn0_gamma"] / jnp.sqrt(params["bn0_var"] + eps)
    t0 = params["bn0_beta"] - params["bn0_mean"] * s0
    x = stacked * s0 + t0
    X = jax.lax.conv_general_dilated(
        x, params["conv_w"], (1, 1), "VALID",
        dimension_numbers=("NCHW", "OIHW", "NCHW"))
    X = X + params["conv_b"][None, :, None, None]
    X = jnp.maximum(X, 0.0)
    X = X.reshape(B, -1)
    X = X @ params["fc_w"].T + params["fc_b"]
    s2 = params["bn2_gamma"] / jnp.sqrt(params["bn2_var"] + eps)
    t2 = params["bn2_beta"] - params["bn2_mean"] * s2
    X = X * s2 + t2
    X = jnp.maximum(X, 0.0)
    X = X @ params["conve_entity"].T + params["b"]
    conve = jax.nn.sigmoid(X)

    e1r = params["cplx_entity_real"][e1]
    e1i = params["cplx_entity_img"][e1]
    rr = params["cplx_rel_real"][r]
    ri = params["cplx_rel_img"][r]
    E2r = params["cplx_entity_real"]
    E2i = params["cplx_entity_img"]
    S = ((rr * e1r) @ E2r.T + (rr * e1i) @ E2i.T
         + (ri * e1r) @ E2i.T - (ri * e1i) @ E2r.T)
    cplx = jax.nn.sigmoid(S)
    return (conve + cplx) / 2.0


# --------------------------------------------------------------------------
# Deterministic synthetic parameters (no checkpoint load)
# --------------------------------------------------------------------------
def init_params(key, cfg):
    D = cfg["entity_dim"]
    d1, d2 = cfg["d1"], cfg["d2"]
    K = cfg["kernel"]
    C = cfg["channels"]
    N = cfg["num_entities"]
    NR = cfg["num_relations"]
    Ho = 2 * d1 - K + 1
    Wo = d2 - K + 1
    feat_dim = C * Ho * Wo

    keys = jax.random.split(key, 20)
    nrm = lambda k, shape, s=0.3: (s * jax.random.normal(k, shape)).astype(jnp.float32)

    return {
        "conve_entity": nrm(keys[0], (N, D)),
        "conve_relation": nrm(keys[1], (NR, D)),
        "conv_w": nrm(keys[2], (C, 1, K, K), 0.2),
        "conv_b": nrm(keys[3], (C,), 0.1),
        "fc_w": nrm(keys[4], (D, feat_dim), 0.1),
        "fc_b": nrm(keys[5], (D,), 0.1),
        "b": jnp.zeros((N,), jnp.float32),
        "bn0_gamma": (1.0 + 0.1 * jax.random.normal(keys[6], ())).astype(jnp.float32),
        "bn0_beta": nrm(keys[7], (), 0.1),
        "bn0_mean": nrm(keys[8], (), 0.05),
        "bn0_var": (1.0 + 0.1 * jax.random.uniform(keys[9], ())).astype(jnp.float32),
        "bn2_gamma": (1.0 + 0.1 * jax.random.normal(keys[10], (D,))).astype(jnp.float32),
        "bn2_beta": nrm(keys[11], (D,), 0.1),
        "bn2_mean": nrm(keys[12], (D,), 0.05),
        "bn2_var": (1.0 + 0.1 * jax.random.uniform(keys[13], (D,))).astype(jnp.float32),
        "cplx_entity_real": nrm(keys[14], (N, D)),
        "cplx_entity_img": nrm(keys[15], (N, D)),
        "cplx_rel_real": nrm(keys[16], (NR, D)),
        "cplx_rel_img": nrm(keys[17], (NR, D)),
    }


if __name__ == "__main__":
    cfg = dict(entity_dim=32, d1=4, d2=8, kernel=3, channels=8,
               num_entities=64, num_relations=16)
    key = jax.random.PRNGKey(0)
    pkey, ekey, rkey = jax.random.split(key, 3)
    params = init_params(pkey, cfg)
    prep = prepare_inference_params(params, cfg)

    B = 8
    e1 = jax.random.randint(ekey, (B,), 0, cfg["num_entities"], dtype=jnp.int32)
    r = jax.random.randint(rkey, (B,), 0, cfg["num_relations"], dtype=jnp.int32)

    out = hyper_e_forward(prep, cfg, e1, r)
    out = jax.block_until_ready(out)
    assert out.shape == (B, cfg["num_entities"])
    assert out.dtype == jnp.float32

    ref = hyper_e_reference(params, cfg, e1, r)
    # bf16 tables / LHS operands in the scoring matmuls -> slightly looser tol
    if not jnp.allclose(out, ref, atol=1e-2, rtol=1e-2):
        max_err = jnp.max(jnp.abs(out - ref))
        raise AssertionError(f"kernel/reference mismatch, max_err={max_err}")

    print("KERNEL_OK")
</pallas_src>

<mosaic_0001>
module attributes {stable_mosaic.version = 11 : i64} {
  func.func @_front_kernel(%arg0: memref<8x64xf32, #tpu.memory_space<vmem>>, %arg1: memref<64x288xf32, #tpu.memory_space<vmem>>, %arg2: memref<1x288xf32, #tpu.memory_space<vmem>>, %arg3: memref<288x32xf32, #tpu.memory_space<vmem>>, %arg4: memref<1x32xf32, #tpu.memory_space<vmem>>, %arg5: memref<8x32xf32, #tpu.memory_space<vmem>>, %arg6: memref<8x32xf32, #tpu.memory_space<vmem>>, %arg7: memref<8x32xf32, #tpu.memory_space<vmem>>, %arg8: memref<8x32xf32, #tpu.memory_space<vmem>>, %arg9: memref<8x32xbf16, #tpu.memory_space<vmem>>, %arg10: memref<8x64xbf16, #tpu.memory_space<vmem>>) attributes {dimension_semantics = [], scalar_prefetch = 0 : i64, scratch_operands = 0 : i64, tpu.core_type = #tpu.core_type<tc>} {
    %c0 = arith.constant 0 : index
    %c0_0 = arith.constant 0 : index
    %0 = vector.load %arg0[%c0, %c0_0] : memref<8x64xf32, #tpu.memory_space<vmem>>, vector<8x64xf32>
    %c0_1 = arith.constant 0 : index
    %c0_2 = arith.constant 0 : index
    %1 = vector.load %arg1[%c0_1, %c0_2] : memref<64x288xf32, #tpu.memory_space<vmem>>, vector<64x288xf32>
    %cst = arith.constant dense<0.000000e+00> : vector<8x288xf32>
    %2 = tpu.matmul %0, %1, %cst {dimension_numbers = #tpu.dot_dimension_numbers<[1], [0], [0], [1], [0, 0, 1, 1], [], []>} : vector<8x64xf32>, vector<64x288xf32>, vector<8x288xf32> -> vector<8x288xf32>
    %c0_3 = arith.constant 0 : index
    %c0_4 = arith.constant 0 : index
    %3 = vector.load %arg2[%c0_3, %c0_4] : memref<1x288xf32, #tpu.memory_space<vmem>>, vector<1x288xf32>
    %4 = vector.broadcast %3 : vector<1x288xf32> to vector<8x288xf32>
    %5 = arith.addf %2, %4 : vector<8x288xf32>
    %cst_5 = arith.constant 0.000000e+00 : f32
    %6 = vector.broadcast %cst_5 : f32 to vector<8x288xf32>
    %7 = arith.maximumf %5, %6 : vector<8x288xf32>
    %c0_6 = arith.constant 0 : index
    %c0_7 = arith.constant 0 : index
    %8 = vector.load %arg3[%c0_6, %c0_7] : memref<288x32xf32, #tpu.memory_space<vmem>>, vector<288x32xf32>
    %cst_8 = arith.constant dense<0.000000e+00> : vector<8x32xf32>
    %9 = tpu.matmul %7, %8, %cst_8 {dimension_numbers = #tpu.dot_dimension_numbers<[1], [0], [0], [1], [0, 0, 1, 1], [], []>} : vector<8x288xf32>, vector<288x32xf32>, vector<8x32xf32> -> vector<8x32xf32>
    %c0_9 = arith.constant 0 : index
    %c0_10 = arith.constant 0 : index
    %10 = vector.load %arg4[%c0_9, %c0_10] : memref<1x32xf32, #tpu.memory_space<vmem>>, vector<1x32xf32>
    %11 = vector.broadcast %10 : vector<1x32xf32> to vector<8x32xf32>
    %12 = arith.addf %9, %11 : vector<8x32xf32>
    %cst_11 = arith.constant 0.000000e+00 : f32
    %13 = vector.broadcast %cst_11 : f32 to vector<8x32xf32>
    %14 = arith.maximumf %12, %13 : vector<8x32xf32>
    %15 = arith.truncf %14 : vector<8x32xf32> to vector<8x32xbf16>
    %c0_12 = arith.constant 0 : index
    %c0_13 = arith.constant 0 : index
    %16 = vector.load %arg9[%c0_12, %c0_13] : memref<8x32xbf16, #tpu.memory_space<vmem>>, vector<8x32xbf16>
    tpu.vector_store %arg9[%c0_12, %c0_13], %15 {strides = array<i32>} : memref<8x32xbf16, #tpu.memory_space<vmem>>, vector<8x32xbf16>,
    %c0_14 = arith.constant 0 : index
    %c0_15 = arith.constant 0 : index
    %17 = vector.load %arg5[%c0_14, %c0_15] : memref<8x32xf32, #tpu.memory_space<vmem>>, vector<8x32xf32>
    %c0_16 = arith.constant 0 : index
    %c0_17 = arith.constant 0 : index
    %18 = vector.load %arg6[%c0_16, %c0_17] : memref<8x32xf32, #tpu.memory_space<vmem>>, vector<8x32xf32>
    %c0_18 = arith.constant 0 : index
    %c0_19 = arith.constant 0 : index
    %19 = vector.load %arg7[%c0_18, %c0_19] : memref<8x32xf32, #tpu.memory_space<vmem>>, vector<8x32xf32>
    %c0_20 = arith.constant 0 : index
    %c0_21 = arith.constant 0 : index
    %20 = vector.load %arg8[%c0_20, %c0_21] : memref<8x32xf32, #tpu.memory_space<vmem>>, vector<8x32xf32>
    %21 = arith.mulf %19, %17 : vector<8x32xf32>
    %22 = arith.mulf %20, %18 : vector<8x32xf32>
    %23 = arith.subf %21, %22 : vector<8x32xf32>
    %24 = arith.mulf %19, %18 : vector<8x32xf32>
    %25 = arith.mulf %20, %17 : vector<8x32xf32>
    %26 = arith.addf %24, %25 : vector<8x32xf32>
    %27 = tpu.concatenate %23, %26 in 1 : vector<8x32xf32>, vector<8x32xf32> -> vector<8x64xf32>
    %28 = arith.truncf %27 : vector<8x64xf32> to vector<8x64xbf16>
    %c0_22 = arith.constant 0 : index
    %c0_23 = arith.constant 0 : index
    %29 = vector.load %arg10[%c0_22, %c0_23] : memref<8x64xbf16, #tpu.memory_space<vmem>>, vector<8x64xbf16>
    tpu.vector_store %arg10[%c0_22, %c0_23], %28 {strides = array<i32>} : memref<8x64xbf16, #tpu.memory_space<vmem>>, vector<8x64xbf16>,
    return
  }
}

</mosaic_0001>

<bundles_post_ra>
// kernel: tpu_custom_call.1
= control target key start
LH: loop header
LB: loop body
LE: loop exit
PB: predicated region body
PF: predicated region fallthrough
CT: control target
= control target key end

     0   :  { %16 = vsyncpa [#allocation3], 0  ;;  %v595_v4 = vmov 0.0   ;;  %vm78_vm0 = vcmask 523264   ;;  %s885_s0 = inlined_call_operand.vmem [shape: f32[8,64], index: 0, kind: input, shape index: {}]   ;;  %s886_s1 = inlined_call_operand.vmem [shape: f32[64,288], index: 1, kind: input, shape index: {}]   ;;  %s887_s2 = inlined_call_operand.vmem [shape: f32[1,288], index: 2, kind: input, shape index: {}]   ;;  %s888_s3 = inlined_call_operand.vmem [shape: f32[288,32], index: 3, kind: input, shape index: {}]   ;;  %s889_s4 = inlined_call_operand.vmem [shape: f32[1,32], index: 4, kind: input, shape index: {}]   ;;  %s890_s5 = inlined_call_operand.vmem [shape: f32[8,32], index: 5, kind: input, shape index: {}]   ;;  %s891_s6 = inlined_call_operand.vmem [shape: f32[8,32], index: 6, kind: input, shape index: {}]   ;;  %s892_s7 = inlined_call_operand.vmem [shape: f32[8,32], index: 7, kind: input, shape index: {}]   ;;  %s893_s8 = inlined_call_operand.vmem [shape: f32[8,32], index: 8, kind: input, shape index: {}]   ;;  %s894_s9 = inlined_call_operand.hbm [shape: bf16[8,32], index: 9, kind: output, shape index: {0}]   ;;  %s895_s10 = inlined_call_operand.hbm [shape: bf16[8,64], index: 10, kind: output, shape index: {1}]  }
   0x1   :  { %v59_v0 = vld [vmem:[%s886_s1 + $0xb0] sm:$0xff]  ;;  %v58_v1 = vld [vmem:[%s886_s1 + $0xa8] sm:$0xff]  ;;  %v56_v2 = vld [vmem:[%s886_s1 + $0x98] sm:$0xff]  ;;  %146 = vmatprep.mubr.f32.mxu1 %v595_v4 }
   0x2   :  { %98 = vmatprep.subr.mxu1 %v59_v0  ;;  %v55_v3 = vld [vmem:[%s886_s1 + $0x90] sm:$0xff]  ;;  %v53_v5 = vld [vmem:[%s886_s1 + $0x80] sm:$0xff]  ;;  %v52_v6 = vld [vmem:[%s886_s1 + $0x78] sm:$0xff] }
   0x3   :  { %99 = vmatpush1.msra.mxu1 %v58_v1  ;;  %v50_v7 = vld [vmem:[%s886_s1 + $0x68] sm:$0xff]  ;;  %v49_v8 = vld [vmem:[%s886_s1 + $0x60] sm:$0xff]  ;;  %v47_v9 = vld [vmem:[%s886_s1 + $0x50] sm:$0xff] }
   0x4   :  { %100 = vmatprep.subr.mxu1 %v56_v2  ;;  %v46_v10 = vld [vmem:[%s886_s1 + $0x48] sm:$0xff]  ;;  %v44_v11 = vld [vmem:[%s886_s1 + $0x38] sm:$0xff]  ;;  %v43_v14 = vld [vmem:[%s886_s1 + $0x30] sm:$0xff] }
   0x5   :  { %101 = vmatpush1.msra.mxu1 %v55_v3  ;;  %v257_v12 = vld [vmem:[%s888_s3 + $0xf8] sm:$0xff]  ;;  %v256_v15 = vld [vmem:[%s888_s3 + $0xf0] sm:$0xff]  ;;  %v41_v17 = vld [vmem:[%s886_s1 + $0x20] sm:$0xff] }
   0x6   :  { %102 = vmatprep.subr.mxu1 %v53_v5  ;;  %v241_v13 = vld [vmem:[%s888_s3 + $0x78] sm:$0xff]  ;;  %476 = vmatprep.subr.mxu0 %v257_v12  ;;  %v240_v16 = vld [vmem:[%s888_s3 + $0x70] sm:$0xff]  ;;  %v255_v18 = vld [vmem:[%s888_s3 + $0xe8] sm:$0xff] }
   0x7   :  { %103 = vmatpush1.msra.mxu1 %v52_v6  ;;  %477 = vmatpush3.msra.mxu0 %v241_v13  ;;  %v40_v19 = vld [vmem:[%s886_s1 + $0x18] sm:$0xff]  ;;  %v239_v20 = vld [vmem:[%s888_s3 + $0x68] sm:$0xff]  ;;  %v254_v22 = vld [vmem:[%s888_s3 + $0xe0] sm:$0xff] }
   0x8   :  { %104 = vmatprep.subr.mxu1 %v50_v7  ;;  %478 = vmatprep.subr.mxu0 %v256_v15  ;;  %v38_v21 = vld [vmem:[%s886_s1 + $0x8] sm:$0xff]  ;;  %v37_v23 = vld [vmem:[%s886_s1] sm:$0xff]  ;;  %v60_v26 = vld [vmem:[%s886_s1 + $0xb8] sm:$0xff] }
   0x9   :  { %105 = vmatpush1.msra.mxu1 %v49_v8  ;;  %479 = vmatpush3.msra.mxu0 %v240_v16  ;;  %v238_v24 = vld [vmem:[%s888_s3 + $0x60] sm:$0xff]  ;;  %v253_v27 = vld [vmem:[%s888_s3 + $0xd8] sm:$0xff] }
   0xa   :  { %106 = vmatprep.subr.mxu1 %v47_v9  ;;  %480 = vmatprep.subr.mxu0 %v255_v18  ;;  %v731_v25 = vld [vmem:[%s885_s0] sm:$0xff] }
   0xb   :  { %107 = vmatpush1.msra.mxu1 %v46_v10  ;;  %481 = vmatpush3.msra.mxu0 %v239_v20 }
   0xc   :  { %108 = vmatprep.subr.mxu1 %v44_v11  ;;  %482 = vmatprep.subr.mxu0 %v254_v22 }
   0xd   :  { %109 = vmatpush1.msra.mxu1 %v43_v14  ;;  %483 = vmatpush3.msra.mxu0 %v238_v24 }
   0xe   :  { %110 = vmatprep.subr.mxu1 %v41_v17 }
   0xf   :  { %111 = vmatpush1.msra.mxu1 %v40_v19 }
  0x10   :  { %112 = vmatprep.subr.mxu1 %v38_v21 }
  0x11   :  { %113 = vmatpush1.msra.mxu1 %v37_v23 }
  0x12   :  { %17 = vsyncpa [#allocation5], 0  ;;  %463 = vmatmul.mubr.msk.f32.vlgmr.msra.gmra.mxu1 %vm78_vm0, %v731_v25  ;;  %516 = vmatprep.subr.mxu1 %v595_v4  ;;  %v57_v28 = vld [vmem:[%s886_s1 + $0xa0] sm:$0xff]  ;;  %v237_v29 = vld [vmem:[%s888_s3 + $0x58] sm:$0xff]  ;;  %vm596_vm1 = vmmov 0   ;;  %v63_v7 = vlaneseq  ;;  %vm269_vm2 = vcmask 261120  }
  0x13   :  { %517 = vmatpush3.msra.mxu1 %v60_v26  ;;  %532 = vmatprep.mubr.msk.f32.mxu1 %vm596_vm1, %v595_v4  ;;  %v252_v30 = vld [vmem:[%s888_s3 + $0xd0] sm:$0xff]  ;;  %v54_v31 = vld [vmem:[%s886_s1 + $0x88] sm:$0xff]  ;;  %v250_v36 = vld [vmem:[%s888_s3 + $0xc0] sm:$0xff]  ;;  %vm433_vm3 = vcmask 519168  }
  0x14   :  { %518 = vmatprep.subr.mxu1 %v595_v4  ;;  %484 = vmatprep.subr.mxu0 %v253_v27  ;;  %v236_v32 = vld [vmem:[%s888_s3 + $0x50] sm:$0xff]  ;;  %v251_v33 = vld [vmem:[%s888_s3 + $0xc8] sm:$0xff]  ;;  %v48_v37 = vld [vmem:[%s886_s1 + $0x58] sm:$0xff]  ;;  %v64_v8 = vshrl.u32 %v63_v7, 7 }
  0x15   :  { %519 = vmatpush3.msra.mxu1 %v57_v28  ;;  %485 = vmatpush3.msra.mxu0 %v237_v29  ;;  %v51_v34 = vld [vmem:[%s886_s1 + $0x70] sm:$0xff]  ;;  %v235_v35 = vld [vmem:[%s888_s3 + $0x48] sm:$0xff]  ;;  %v234_v38 = vld [vmem:[%s888_s3 + $0x40] sm:$0xff] }
  0x16   :  { %520 = vmatprep.subr.mxu1 %v595_v4  ;;  %486 = vmatprep.subr.mxu0 %v252_v30  ;;  %v249_v39 = vld [vmem:[%s888_s3 + $0xb8] sm:$0xff]  ;;  %v45_v40 = vld [vmem:[%s886_s1 + $0x40] sm:$0xff]  ;;  %v248_v42 = vld [vmem:[%s888_s3 + $0xb0] sm:$0xff]  ;;  %v65_v9 = vsub.s32 0, %v64_v8  ;;  %v69_v11 = vsub.s32 1, %v64_v8  ;;  %v73_v20 = vsub.s32 2, %v64_v8 }
  0x17   :  { %521 = vmatpush3.msra.mxu1 %v54_v31  ;;  %487 = vmatpush3.msra.mxu0 %v236_v32  ;;  %v233_v41 = vld [vmem:[%s888_s3 + $0x38] sm:$0xff]  ;;  %v42_v43 = vld [vmem:[%s886_s1 + $0x28] sm:$0xff]  ;;  %v232_v44 = vld [vmem:[%s888_s3 + $0x30] sm:$0xff] }
  0x18   :  { %522 = vmatprep.subr.mxu1 %v595_v4  ;;  %488 = vmatprep.subr.mxu0 %v251_v33  ;;  %v247_v45 = vld [vmem:[%s888_s3 + $0xa8] sm:$0xff]  ;;  %v39_v46 = vld [vmem:[%s886_s1 + $0x10] sm:$0xff]  ;;  %v246_v48 = vld [vmem:[%s888_s3 + $0xa0] sm:$0xff] }
  0x19   :  { %523 = vmatpush3.msra.mxu1 %v51_v34  ;;  %489 = vmatpush3.msra.mxu0 %v235_v35  ;;  %v231_v47 = vld [vmem:[%s888_s3 + $0x28] sm:$0xff]  ;;  %v230_v49 = vld [vmem:[%s888_s3 + $0x20] sm:$0xff]  ;;  %v245_v50 = vld [vmem:[%s888_s3 + $0x98] sm:$0xff] }
  0x1a   :  { %524 = vmatprep.subr.mxu1 %v595_v4  ;;  %490 = vmatprep.subr.mxu0 %v250_v36  ;;  %v229_v51 = vld [vmem:[%s888_s3 + $0x18] sm:$0xff]  ;;  %v244_v52 = vld [vmem:[%s888_s3 + $0x90] sm:$0xff]  ;;  %v243_v54 = vld [vmem:[%s888_s3 + $0x88] sm:$0xff] }
  0x1b   :  { %525 = vmatpush3.msra.mxu1 %v48_v37  ;;  %491 = vmatpush3.msra.mxu0 %v234_v38  ;;  %v228_v53 = vld [vmem:[%s888_s3 + $0x10] sm:$0xff]  ;;  %v227_v55 = vld [vmem:[%s888_s3 + $0x8] sm:$0xff]  ;;  %v242_v56 = vld [vmem:[%s888_s3 + $0x80] sm:$0xff] }
  0x1c   :  { %526 = vmatprep.subr.mxu1 %v595_v4  ;;  %492 = vmatprep.subr.mxu0 %v249_v39  ;;  %v226_v57 = vld [vmem:[%s888_s3] sm:$0xff]  ;;  %v261_v58 = vld [vmem:[%s888_s3 + $0x118] sm:$0xff]  ;;  %v260_v59 = vld [vmem:[%s888_s3 + $0x110] sm:$0xff] }
  0x1d   :  { %527 = vmatpush3.msra.mxu1 %v45_v40  ;;  %493 = vmatpush3.msra.mxu0 %v233_v41  ;;  %v259_v60 = vld [vmem:[%s888_s3 + $0x108] sm:$0xff]  ;;  %v258_v61 = vld [vmem:[%s888_s3 + $0x100] sm:$0xff]  ;;  %s597_s3 = smov 32  }
  0x1e   :  { %528 = vmatprep.subr.mxu1 %v595_v4  ;;  %494 = vmatprep.subr.mxu0 %v248_v42  ;;  %v417_v62 = vld [vmem:[%s890_s5] sm:$0xff] }
  0x1f   :  { %529 = vmatpush3.msra.mxu1 %v42_v43  ;;  %495 = vmatpush3.msra.mxu0 %v232_v44  ;;  %v418_v63 = vld [vmem:[%s891_s6] sm:$0xff] }
  0x20   :  { %530 = vmatprep.subr.mxu1 %v595_v4  ;;  %496 = vmatprep.subr.mxu0 %v247_v45  ;;  %v419_v0 = vld [vmem:[%s892_s7] sm:$0xff] }
  0x21   :  { %531 = vmatpush3.msra.mxu1 %v39_v46  ;;  %497 = vmatpush3.msra.mxu0 %v231_v47  ;;  %v420_v1 = vld [vmem:[%s893_s8] sm:$0xff]  ;;  %v421_v2 = vmul.f32 %v419_v0, %v417_v62  ;;  %v424_v3 = vmul.f32 %v419_v0, %v418_v63 }
  0x22   :  { %533 = vmatmul.mubr.msk.f32.vlgmr.msra.gmra.mxu1 %vm78_vm0, %v731_v25  ;;  %498 = vmatprep.subr.mxu0 %v246_v48  ;;  %v425_v5 = vmul.f32 %v420_v1, %v417_v62  ;;  %v61_v10 = vld [vmem:[%s887_s2] sm:$0x7]  ;;  %s598_s2 = smov [#allocation4]  }
  0x23   :  { %499 = vmatpush3.msra.mxu0 %v230_v49  ;;  %535 = vmatprep.subr.mxu1 %v595_v4  ;;  %v66_v12 = vrot.slane %v61_v10, %v65_v9  ;;  %v70_v13 = vrot.slane %v61_v10, %v69_v11  ;;  %v74_v21 = vrot.slane %v61_v10, %v73_v20  ;;  %s451_s7 = sshll.u32 %s598_s2, 4  ;;  %s452_s7 = int_to_ptr.vmem [resolvable:$true] %s451_s7 }
  0x24   :  { %543 = vmatprep.mubr.msk.f32.mxu1 %vm596_vm1, %v595_v4  ;;  %500 = vmatprep.subr.mxu0 %v245_v50  ;;  %v426_v6 = vadd.f32 %v425_v5, %v424_v3  ;;  %s551_s8 = scalar_lea.vmem %s452_s7, 64  ;;  %p556_p1 = scmp.lt.s32.totalorder %s452_s7, %s452_s7 }
  0x25   :  { %501 = vmatpush3.msra.mxu0 %v229_v51  ;;  %536 = vmatpush3.msra.mxu1 %v261_v58  ;;  %p552_p0 = scmp.ne.s32.totalorder %s452_s7, %s551_s8  ;;  %p557_p2 = scmp.lt.s32.totalorder %s551_s8, %s551_s8 }
  0x26   :  { %502 = vmatprep.subr.mxu0 %v244_v52  ;;  %537 = vmatprep.subr.mxu1 %v595_v4 }
  0x27   :  { %503 = vmatpush3.msra.mxu0 %v228_v53  ;;  %538 = vmatpush3.msra.mxu1 %v260_v59  ;;  %p558_p3 = por %p557_p2, %p556_p1 }
  0x28   :  { %504 = vmatprep.subr.mxu0 %v243_v54  ;;  %539 = vmatprep.subr.mxu1 %v595_v4 }
  0x29   :  { %505 = vmatpush3.msra.mxu0 %v227_v55  ;;  %540 = vmatpush3.msra.mxu1 %v259_v60  ;;  %p559_p4 = pnand %p558_p3, %p552_p0 }
  0x2a   :  { %506 = vmatprep.subr.mxu0 %v242_v56  ;;  %541 = vmatprep.subr.mxu1 %v595_v4  ;;  %v422_v4 = vmul.f32 %v420_v1, %v418_v63 }
  0x2b   :  { %507 = vmatpush3.msra.mxu0 %v226_v57  ;;  %542 = vmatpush3.msra.mxu1 %v258_v61 }
  0x2c   :  { %428 = vrot.lane.b32.xlu0 %v426_v6, %s597_s3  ;;  %v423_v26 = vsub.f32 %v421_v2, %v422_v4 }
  0x9e   :  { %v429_v27 = vpop.permute.xlu0 %428 }
  0x9f   :  { %v431_v28 = vsel %vm269_vm2, %v423_v26, %v429_v27 }
  0xa0   :  { %v432_v29 = vpack.c.bf16 %v431_v28, %v431_v28 }
  0xa2   :  { %434 = vst.msk [vmem:[#allocation4] sm:$0xf] %vm433_vm3, %v432_v29 }
  0xd2   :  { %v148_v14 = vpop.f32.mrf.mxu1 }
  0xd3   :  { %v149_v15 = vadd.f32 %v148_v14, %v66_v12 }
  0xd4   :  { %v150_v16 = vpop.f32.mrf.mxu1 }
  0xd5   :  { %v151_v17 = vadd.f32 %v150_v16, %v70_v13  ;;  %v223_v19 = vmax.f32 %v149_v15, 0.0 }
  0xd7   :  { %v224_v18 = vmax.f32 %v151_v17, 0.0 }
  0xd9   :  { %337 = vmatprep.mubr.f32.mxu0 %v224_v18 }
  0xda   :  { %338 = vmatmul.mubr.f32.vlgmr.msra.gmra.mxu0 %v223_v19 }
  0xe2   :  { %v219_v22 = vpop.f32.mrf.mxu1 }
  0xe3   :  { %v220_v23 = vadd.f32 %v219_v22, %v74_v21 }
  0xe4   :  { %v534_v24 = vpop.f32.mrf.mxu1 }
  0xe5   :  { %v225_v25 = vmax.f32 %v220_v23, 0.0 }
  0xe7   :  { %544 = vmatmul.mubr.msk.f32.vlgmr.msra.gmra.mxu1 %vm269_vm2, %v225_v25 }
  0xe8   :  { %562 = shalt.err (!%p559_p4)
}
  0xe9   :  { %454 = dma.vmem_to_hbm [thread:$0]  %s452_s7, 64, %s895_s10, [#allocation5]   ;;  %v465_v33 = vld [vmem:[%s889_s4] ss:$0 sm:$0xff]  ;;  %vm415_vm4 = vcmask 257024  }
  0xea   :  { %s599_s21 = smov [#allocation2]  }
  0xeb   :  { %s441_s22 = sshll.u32 %s599_s21, 4  ;;  %s442_s22 = int_to_ptr.vmem [resolvable:$true] %s441_s22 }
  0xec   :  { %s571_s23 = scalar_lea.vmem %s442_s22, 64  ;;  %p576_p6 = scmp.lt.s32.totalorder %s442_s22, %s442_s22 }
  0xed   :  { %p572_p5 = scmp.ne.s32.totalorder %s442_s22, %s571_s23  ;;  %p577_p7 = scmp.lt.s32.totalorder %s571_s23, %s571_s23 }
  0xef   :  { %p578_p8 = por %p577_p7, %p576_p6 }
  0xf1   :  { %p579_p9 = pnand %p578_p8, %p572_p5 }
 0x19a   :  { %v508_v30 = vpop.f32.mrf.mxu0 }
 0x19c   :  { %v509_v31 = vpop.f32.mrf.mxu0 }
 0x19d   :  { %v510_v32 = vadd.f32 %v509_v31, %v508_v30 }
 0x19f   :  { %v340_v34 = vadd.f32 %v510_v32, %v465_v33 }
 0x1a7   :  { %v409_v35 = vpop.f32.mrf.mxu1 }
 0x1a8   :  { %v410_v36 = vadd.f32 %v409_v35, %v340_v34 }
 0x1a9   :  { %v545_v37 = vpop.f32.mrf.mxu1 }
 0x1aa   :  { %v413_v38 = vmax.f32 %v410_v36, 0.0 }
 0x1ac   :  { %v414_v39 = vpack.c.bf16 %v413_v38, %v413_v38 }
 0x1ae   :  { %416 = vst.msk [vmem:[#allocation2] sm:$0xf] %vm415_vm4, %v414_v39 }
 0x1af   :  { %582 = shalt.err (!%p579_p9)
}
 0x1b0   :  { %444 = dma.vmem_to_hbm [thread:$0]  %s442_s22, 64, %s894_s9, [#allocation3]  }
 0x1b1   :  { %591 = dma.done.wait [#allocation3], 64  }
 0x1b2   :  { %592 = vsyncadd [#allocation3], 4294967232 }
 0x1b3   :  { %593 = dma.done.wait [#allocation5], 64  }
 0x1b4   :  { %594 = vsyncadd [#allocation5], 4294967232 }
 0x1b5   :  { %461 = vsyncpa [#allocation3], 1 }
 0x1b6   :  { %462 = vsyncpa [#allocation5], 1 }

</bundles_post_ra>
